<compile_context>
chip_gen: v6e
topology: v6e:2x2x1
jax: 0.10.0
libtpu: 0.0.40
codegen_flags: <defaults>
</compile_context>

<pallas_src>
import jax
import jax.numpy as jnp
from jax.experimental import pallas as pl
from jax.experimental.pallas import tpu as pltpu

# Small, lane-friendly shapes consistent with the module (one hidden layer).
B, BAG, IN_DIM, HIDDEN, NUM_CLASSES = 16, 16, 128, 128, 4
LANE = 128                 # final Linear zero-padded to a full 128-lane output


def classifier_kernel(feat_ref, attn_ref, w1_ref, b1_ref, w2_ref, b2_ref, out_ref):
    feats = feat_ref[...]                               # (B, BAG, IN_DIM) f32
    attn = attn_ref[...][..., None]                     # (B, BAG) -> (B, BAG, 1)

    # pooling_mode = Sum(): torch.sum(attention * features, dim=1, keepdim=False)
    pooled = jnp.sum(attn * feats, axis=1)              # (B, IN_DIM)

    # self.model = Linear(IN_DIM, HIDDEN) -> ReLU -> Linear(HIDDEN, OUT [lane-padded])
    h = jnp.dot(pooled, w1_ref[...], preferred_element_type=jnp.float32) + b1_ref[...]
    h = jnp.maximum(h, 0.0)                             # hidden_activation = ReLU
    logits = jnp.dot(h, w2_ref[...], preferred_element_type=jnp.float32) + b2_ref[...]

    out_ref[...] = logits                               # (B, 128) lane-dense store


def default_classifier(features, attention, params):
    """features: (B, BAG, IN_DIM), attention: (B, BAG) -> {'logits': (B, NUM_CLASSES)}

    params = (w1, b1, w2_padded, b2_padded) with the last Linear already padded
    to LANE output columns (done once at init, not per call).
    """
    w1, b1, w2p, b2p = params

    vmem = pl.BlockSpec(memory_space=pltpu.MemorySpace.VMEM)

    padded_logits = pl.pallas_call(
        classifier_kernel,
        in_specs=[vmem] * 6,
        out_specs=vmem,
        out_shape=jax.ShapeDtypeStruct((B, LANE), jnp.float32),
    )(features, attention, w1, b1, w2p, b2p)

    # Slice off padding lanes immediately (padding columns are not real logits).
    return {'logits': padded_logits[:, :NUM_CLASSES]}


def reference(features, attention, params):
    w1, b1, w2p, b2p = params
    pooled = jnp.sum(attention[..., None] * features, axis=1)
    h = jax.nn.relu(pooled @ w1 + b1)
    return (h @ w2p + b2p)[:, :NUM_CLASSES]


def init_params(key):
    ks = jax.random.split(key, 4)
    s = 0.1
    w1 = s * jax.random.normal(ks[0], (IN_DIM, HIDDEN), jnp.float32)
    b1 = s * jax.random.normal(ks[1], (1, HIDDEN), jnp.float32)
    w2 = s * jax.random.normal(ks[2], (HIDDEN, NUM_CLASSES), jnp.float32)
    b2 = s * jax.random.normal(ks[3], (1, NUM_CLASSES), jnp.float32)
    # Static padding of the last projection to a full 128-lane slab (done once here,
    # hoisted out of the per-call wrapper per the perf review).
    w2p = jnp.zeros((HIDDEN, LANE), jnp.float32).at[:, :NUM_CLASSES].set(w2)
    b2p = jnp.zeros((1, LANE), jnp.float32).at[:, :NUM_CLASSES].set(b2)
    return (w1, b1, w2p, b2p)


if __name__ == "__main__":
    key = jax.random.PRNGKey(0)
    kf, ka, kp = jax.random.split(key, 3)
    features = jax.random.normal(kf, (B, BAG, IN_DIM), jnp.float32)
    # MIL-style attention weights (non-negative, sum to 1 over the bag axis), 2-D layout.
    attention = jax.nn.softmax(jax.random.normal(ka, (B, BAG), jnp.float32), axis=1)
    params = init_params(kp)

    out = default_classifier(features, attention, params)
    out = jax.block_until_ready(out)

    ref_logits = reference(features, attention, params)
    assert out['logits'].shape == (B, NUM_CLASSES)
    assert jnp.allclose(out['logits'], ref_logits, atol=1e-4, rtol=1e-4)

    print("KERNEL_OK")
</pallas_src>

<mosaic_0001>
module attributes {stable_mosaic.version = 11 : i64} {
  func.func @classifier_kernel(%arg0: memref<16x16x128xf32, #tpu.memory_space<vmem>>, %arg1: memref<16x16xf32, #tpu.memory_space<vmem>>, %arg2: memref<128x128xf32, #tpu.memory_space<vmem>>, %arg3: memref<1x128xf32, #tpu.memory_space<vmem>>, %arg4: memref<128x128xf32, #tpu.memory_space<vmem>>, %arg5: memref<1x128xf32, #tpu.memory_space<vmem>>, %arg6: memref<16x128xf32, #tpu.memory_space<vmem>>) attributes {dimension_semantics = [], scalar_prefetch = 0 : i64, scratch_operands = 0 : i64, tpu.core_type = #tpu.core_type<tc>} {
    %c0 = arith.constant 0 : index
    %c0_0 = arith.constant 0 : index
    %c0_1 = arith.constant 0 : index
    %0 = vector.load %arg0[%c0, %c0_0, %c0_1] : memref<16x16x128xf32, #tpu.memory_space<vmem>>, vector<16x16x128xf32>
    %c0_2 = arith.constant 0 : index
    %c0_3 = arith.constant 0 : index
    %1 = vector.load %arg1[%c0_2, %c0_3] : memref<16x16xf32, #tpu.memory_space<vmem>>, vector<16x16xf32>
    %2 = vector.shape_cast %1 : vector<16x16xf32> to vector<16x16x1xf32>
    %3 = vector.broadcast %2 : vector<16x16x1xf32> to vector<16x16x128xf32>
    %4 = arith.mulf %3, %0 : vector<16x16x128xf32>
    %cst = arith.constant dense<0.000000e+00> : vector<16x128xf32>
    %5 = vector.multi_reduction <add>, %4, %cst [1] : vector<16x16x128xf32> to vector<16x128xf32>
    %c0_4 = arith.constant 0 : index
    %c0_5 = arith.constant 0 : index
    %6 = vector.load %arg2[%c0_4, %c0_5] : memref<128x128xf32, #tpu.memory_space<vmem>>, vector<128x128xf32>
    %cst_6 = arith.constant dense<0.000000e+00> : vector<16x128xf32>
    %7 = tpu.matmul %5, %6, %cst_6 {dimension_numbers = #tpu.dot_dimension_numbers<[1], [0], [0], [1], [0, 0, 1, 1], [], []>} : vector<16x128xf32>, vector<128x128xf32>, vector<16x128xf32> -> vector<16x128xf32>
    %c0_7 = arith.constant 0 : index
    %c0_8 = arith.constant 0 : index
    %8 = vector.load %arg3[%c0_7, %c0_8] : memref<1x128xf32, #tpu.memory_space<vmem>>, vector<1x128xf32>
    %9 = vector.broadcast %8 : vector<1x128xf32> to vector<16x128xf32>
    %10 = arith.addf %7, %9 : vector<16x128xf32>
    %cst_9 = arith.constant 0.000000e+00 : f32
    %11 = vector.broadcast %cst_9 : f32 to vector<16x128xf32>
    %12 = arith.maximumf %10, %11 : vector<16x128xf32>
    %c0_10 = arith.constant 0 : index
    %c0_11 = arith.constant 0 : index
    %13 = vector.load %arg4[%c0_10, %c0_11] : memref<128x128xf32, #tpu.memory_space<vmem>>, vector<128x128xf32>
    %cst_12 = arith.constant dense<0.000000e+00> : vector<16x128xf32>
    %14 = tpu.matmul %12, %13, %cst_12 {dimension_numbers = #tpu.dot_dimension_numbers<[1], [0], [0], [1], [0, 0, 1, 1], [], []>} : vector<16x128xf32>, vector<128x128xf32>, vector<16x128xf32> -> vector<16x128xf32>
    %c0_13 = arith.constant 0 : index
    %c0_14 = arith.constant 0 : index
    %15 = vector.load %arg5[%c0_13, %c0_14] : memref<1x128xf32, #tpu.memory_space<vmem>>, vector<1x128xf32>
    %16 = vector.broadcast %15 : vector<1x128xf32> to vector<16x128xf32>
    %17 = arith.addf %14, %16 : vector<16x128xf32>
    %c0_15 = arith.constant 0 : index
    %c0_16 = arith.constant 0 : index
    %18 = vector.load %arg6[%c0_15, %c0_16] : memref<16x128xf32, #tpu.memory_space<vmem>>, vector<16x128xf32>
    tpu.vector_store %arg6[%c0_15, %c0_16], %17 {strides = array<i32>} : memref<16x128xf32, #tpu.memory_space<vmem>>, vector<16x128xf32>,
    return
  }
}

</mosaic_0001>

<bundles_post_ra>
// kernel: tpu_custom_call.1
= control target key start
LH: loop header
LB: loop body
LE: loop exit
PB: predicated region body
PF: predicated region fallthrough
CT: control target
= control target key end

     0   :  { %11 = vsyncpa [#allocation3], 0  ;;  %s1036_s0 = inlined_call_operand.hbm [shape: f32[16,16,128], index: 0, kind: input, shape index: {}]   ;;  %s1037_s1 = inlined_call_operand.hbm [shape: f32[16,16], index: 1, kind: input, shape index: {}]   ;;  %s1038_s2 = inlined_call_operand.hbm [shape: f32[128,128], index: 2, kind: input, shape index: {}]   ;;  %s1039_s3 = inlined_call_operand.vmem [shape: f32[1,128], index: 3, kind: input, shape index: {}]   ;;  %s1040_s4 = inlined_call_operand.hbm [shape: f32[128,128], index: 4, kind: input, shape index: {}]   ;;  %s1041_s5 = inlined_call_operand.vmem [shape: f32[1,128], index: 5, kind: input, shape index: {}]   ;;  %s1042_s6 = inlined_call_operand.hbm [shape: f32[16,128], index: 6, kind: output, shape index: {}]  }
   0x1   :  { %12 = vsyncpa [#allocation6], 0 }
   0x2   :  { %13 = vsyncpa [#allocation9], 0 }
   0x3   :  { %14 = vsyncpa [#allocation4], 0  ;;  %s914_s21 = smov [#allocation5]   ;;  %s915_s23 = smov [#allocation2]  }
   0x4   :  { %s32_s22 = sshll.u32 %s914_s21, 4  ;;  %s20_s24 = sshll.u32 %s915_s23, 4  ;;  %s33_s22 = int_to_ptr.vmem [resolvable:$true] %s32_s22  ;;  %s21_s24 = int_to_ptr.vmem [resolvable:$true] %s20_s24 }
   0x5   :  { %s814_s25 = scalar_lea.vmem %s33_s22, 256  ;;  %p819_p1 = scmp.lt.s32.totalorder %s33_s22, %s33_s22 }
   0x6   :  { %p815_p0 = scmp.ne.s32.totalorder %s33_s22, %s814_s25  ;;  %p820_p2 = scmp.lt.s32.totalorder %s814_s25, %s814_s25 }
   0x8   :  { %p821_p3 = por %p820_p2, %p819_p1 }
   0xa   :  { %p822_p4 = pnand %p821_p3, %p815_p0 }
   0xc   :  { %825 = shalt.err (!%p822_p4)
}
   0xd   :  { %s916_s26 = smov 128   ;;  %s917_s27 = smov 8  }
   0xe   :  { %38 = dma.hbm_to_vmem [thread:$0]  %s1037_s1, 256, %s33_s22, [#allocation6], %s916_s26, %s916_s26, %s917_s27  }
   0xf   :  { %s834_s30 = scalar_lea.vmem %s21_s24, 4096  ;;  %p839_p6 = scmp.lt.s32.totalorder %s21_s24, %s21_s24 }
  0x10   :  { %p835_p5 = scmp.ne.s32.totalorder %s21_s24, %s834_s30  ;;  %p840_p7 = scmp.lt.s32.totalorder %s834_s30, %s834_s30 }
  0x12   :  { %p841_p8 = por %p840_p7, %p839_p6 }
  0x14   :  { %p842_p9 = pnand %p841_p8, %p835_p5 }
  0x16   :  { %845 = shalt.err (!%p842_p9)
}
  0x17   :  { %26 = dma.hbm_to_vmem [thread:$0]  %s1036_s0, 4096, %s21_s24, [#allocation3], %s916_s26, %s916_s26, %s917_s27  }
  0x18   :  { %s918_s9 = smov [#allocation7]   ;;  %s919_s11 = smov [#allocation8]  }
  0x19   :  { %s44_s10 = sshll.u32 %s918_s9, 4  ;;  %s58_s12 = sshll.u32 %s919_s11, 4  ;;  %s45_s10 = int_to_ptr.vmem [resolvable:$true] %s44_s10  ;;  %s59_s12 = int_to_ptr.vmem [resolvable:$true] %s58_s12 }
  0x1a   :  { %s854_s1 = scalar_lea.vmem %s45_s10, 2048  ;;  %p859_p11 = scmp.lt.s32.totalorder %s45_s10, %s45_s10 }
  0x1b   :  { %p855_p10 = scmp.ne.s32.totalorder %s45_s10, %s854_s1  ;;  %p860_p12 = scmp.lt.s32.totalorder %s854_s1, %s854_s1 }
  0x1d   :  { %p861_p13 = por %p860_p12, %p859_p11 }
  0x1f   :  { %p862_p0 = pnand %p861_p13, %p855_p10 }
  0x21   :  { %865 = shalt.err (!%p862_p0)
}
  0x22   :  { %50 = dma.hbm_to_vmem [thread:$0]  %s1038_s2, 2048, %s45_s10, [#allocation6], %s916_s26, %s916_s26, %s917_s27  }
  0x23   :  { %s874_s0 = scalar_lea.vmem %s59_s12, 2048  ;;  %p879_p2 = scmp.lt.s32.totalorder %s59_s12, %s59_s12 }
  0x24   :  { %p875_p1 = scmp.ne.s32.totalorder %s59_s12, %s874_s0  ;;  %p880_p3 = scmp.lt.s32.totalorder %s874_s0, %s874_s0 }
  0x26   :  { %p881_p4 = por %p880_p3, %p879_p2 }
  0x28   :  { %p882_p5 = pnand %p881_p4, %p875_p1 }
  0x2a   :  { %885 = shalt.err (!%p882_p5)
}
  0x2b   :  { %64 = dma.hbm_to_vmem [thread:$0]  %s1040_s4, 2048, %s59_s12, [#allocation9], %s916_s26, %s916_s26, %s917_s27  }
  0x2c   :  { %906 = dma.done.wait [#allocation3], 4096  }
  0x2d   :  { %907 = vsyncadd [#allocation3], 4294963200 }
  0x2e   :  { %908 = dma.done.wait [#allocation6], 2304  }
  0x2f   :  { %909 = vsyncadd [#allocation6], 4294964992 }
  0x30   :  { %910 = dma.done.wait [#allocation9], 2048  }
  0x31   :  { %911 = vsyncadd [#allocation9], 4294965248  ;;  %v113_v0 = vlaneseq  ;;  %v984_v4 = vld [vmem:[#allocation5] sm:$0xff]  ;;  %v990_v9 = vld [vmem:[#allocation5 + $0x8] sm:$0xff]  ;;  %vm472_vm0 = vcmask 1041409   ;;  %vm474_vm1 = vcmask 1042434  }
  0x32   :  { %v448_v20 = vld [vmem:[#allocation7 + $0x78] sm:$0xff]  ;;  %v447_v21 = vld [vmem:[#allocation7 + $0x70] sm:$0xff]  ;;  %v446_v24 = vld [vmem:[#allocation7 + $0x68] sm:$0xff]  ;;  %vm476_vm2 = vcmask 1043459   ;;  %vm478_vm3 = vcmask 1044484   ;;  %vm480_vm4 = vcmask 1045509  }
  0x33   :  { %v980_v1 = vshrl.u32 %v113_v0, 7  ;;  %729 = vmatprep.subr.mxu0 %v448_v20  ;;  %v445_v25 = vld [vmem:[#allocation7 + $0x60] sm:$0xff]  ;;  %v444_v27 = vld [vmem:[#allocation7 + $0x58] sm:$0xff]  ;;  %v443_v28 = vld [vmem:[#allocation7 + $0x50] sm:$0xff]  ;;  %vm482_vm5 = vcmask 1046534   ;;  %vm484_vm6 = vcmask 1047559  }
  0x34   :  { %730 = vmatpush3.msra.mxu0 %v448_v20  ;;  %v442_v31 = vld [vmem:[#allocation7 + $0x48] sm:$0xff]  ;;  %v441_v33 = vld [vmem:[#allocation7 + $0x40] sm:$0xff]  ;;  %v440_v34 = vld [vmem:[#allocation7 + $0x38] sm:$0xff]  ;;  %s920_s19 = smov [#allocation10]  }
  0x35   :  { %v126_v2 = vsub.s32 1, %v980_v1  ;;  %v115_v3 = vsub.s32 0, %v980_v1  ;;  %v137_v7 = vsub.s32 2, %v980_v1  ;;  %v148_v12 = vsub.s32 3, %v980_v1  ;;  %731 = vmatprep.subr.mxu0 %v447_v21  ;;  %v439_v36 = vld [vmem:[#allocation7 + $0x30] sm:$0xff]  ;;  %v438_v38 = vld [vmem:[#allocation7 + $0x28] sm:$0xff] }
  0x36   :  { %v159_v15 = vsub.s32 4, %v980_v1  ;;  %v170_v18 = vsub.s32 5, %v980_v1  ;;  %v181_v23 = vsub.s32 6, %v980_v1  ;;  %732 = vmatpush3.msra.mxu0 %v447_v21  ;;  %v192_v30 = vsub.s32 7, %v980_v1  ;;  %v437_v39 = vld [vmem:[#allocation7 + $0x20] sm:$0xff]  ;;  %v436_v40 = vld [vmem:[#allocation7 + $0x18] sm:$0xff] }
  0x37   :  { %v127_v5 = vrot.slane %v984_v4, %v126_v2  ;;  %v116_v6 = vrot.slane %v984_v4, %v115_v3  ;;  %v138_v8 = vrot.slane %v984_v4, %v137_v7  ;;  %v204_v10 = vrot.slane %v990_v9, %v115_v3  ;;  %733 = vmatprep.subr.mxu0 %v446_v24  ;;  %v435_v41 = vld [vmem:[#allocation7 + $0x10] sm:$0xff]  ;;  %v587_v42 = vld [vmem:[#allocation8 + $0x78] sm:$0xff]  ;;  %v434_v44 = vld [vmem:[#allocation7 + $0x8] sm:$0xff]  ;;  %s677_s20 = sshll.u32 %s920_s19, 4  ;;  %s678_s20 = int_to_ptr.vmem [resolvable:$true] %s677_s20 }
  0x38   :  { %v215_v11 = vrot.slane %v990_v9, %v126_v2  ;;  %v149_v13 = vrot.slane %v984_v4, %v148_v12  ;;  %v226_v14 = vrot.slane %v990_v9, %v137_v7  ;;  %v160_v16 = vrot.slane %v984_v4, %v159_v15  ;;  %734 = vmatpush3.msra.mxu0 %v446_v24  ;;  %v586_v43 = vld [vmem:[#allocation8 + $0x70] sm:$0xff]  ;;  %v585_v45 = vld [vmem:[#allocation8 + $0x68] sm:$0xff]  ;;  %v433_v46 = vld [vmem:[#allocation7] sm:$0xff]  ;;  %p891_p7 = scmp.lt.s32.totalorder %s678_s20, %s678_s20 }
  0x39   :  { %129 = vbcast.lane.b32.xlu1 %v127_v5, 256  ;;  %118 = vbcast.lane.b32.xlu0 %v116_v6, 256  ;;  %v237_v17 = vrot.slane %v990_v9, %v148_v12  ;;  %v171_v19 = vrot.slane %v984_v4, %v170_v18  ;;  %v248_v22 = vrot.slane %v990_v9, %v159_v15  ;;  %v584_v47 = vld [vmem:[#allocation8 + $0x60] sm:$0xff]  ;;  %v583_v48 = vld [vmem:[#allocation8 + $0x58] sm:$0xff]  ;;  %v582_v49 = vld [vmem:[#allocation8 + $0x50] sm:$0xff] }
  0x3a   :  { %v182_v26 = vrot.slane %v984_v4, %v181_v23  ;;  %735 = vmatprep.subr.mxu0 %v445_v25  ;;  %v259_v29 = vrot.slane %v990_v9, %v170_v18  ;;  %v193_v32 = vrot.slane %v984_v4, %v192_v30  ;;  %v270_v35 = vrot.slane %v990_v9, %v181_v23  ;;  %v581_v50 = vld [vmem:[#allocation8 + $0x48] sm:$0xff]  ;;  %v580_v51 = vld [vmem:[#allocation8 + $0x40] sm:$0xff]  ;;  %v579_v52 = vld [vmem:[#allocation8 + $0x38] sm:$0xff] }
  0x3b   :  { %736 = vmatpush3.msra.mxu0 %v445_v25  ;;  %v281_v37 = vrot.slane %v990_v9, %v192_v30  ;;  %764 = vmatprep.subr.mxu1 %v587_v42  ;;  %v578_v53 = vld [vmem:[#allocation8 + $0x30] sm:$0xff]  ;;  %v577_v54 = vld [vmem:[#allocation8 + $0x28] sm:$0xff]  ;;  %v576_v55 = vld [vmem:[#allocation8 + $0x20] sm:$0xff] }
  0x3c   :  { %737 = vmatprep.subr.mxu0 %v444_v27  ;;  %765 = vmatpush3.msra.mxu1 %v587_v42  ;;  %v82_v2 = vld [vmem:[#allocation2 + $0x18] sm:$0xff]  ;;  %v80_v3 = vld [vmem:[#allocation2 + $0x8] sm:$0xff]  ;;  %v81_v4 = vld [vmem:[#allocation2 + $0x10] sm:$0xff] }
  0x3d   :  { %133 = vbcast.lane.b32.xlu1 %v127_v5, 264  ;;  %122 = vbcast.lane.b32.xlu0 %v116_v6, 264  ;;  %v79_v7 = vld [vmem:[#allocation2] sm:$0xff]  ;;  %v86_v20 = vld [vmem:[#allocation2 + $0x38] sm:$0xff]  ;;  %v85_v21 = vld [vmem:[#allocation2 + $0x30] sm:$0xff] }
  0x3e   :  { %738 = vmatpush3.msra.mxu0 %v444_v27  ;;  %766 = vmatprep.subr.mxu1 %v586_v43  ;;  %v87_v27 = vld [vmem:[#allocation2 + $0x40] sm:$0xff]  ;;  %v98_v42 = vld [vmem:[#allocation2 + $0x98] sm:$0xff] }
  0x3f   :  { %739 = vmatprep.subr.mxu0 %v443_v28  ;;  %767 = vmatpush3.msra.mxu1 %v586_v43  ;;  %v97_v43 = vld [vmem:[#allocation2 + $0x90] sm:$0xff] }
  0x40   :  { %740 = vmatpush3.msra.mxu0 %v443_v28  ;;  %768 = vmatprep.subr.mxu1 %v585_v45 }
  0x41   :  { %144 = vbcast.lane.b32.xlu1 %v138_v8, 264  ;;  %140 = vbcast.lane.b32.xlu0 %v138_v8, 256 }
  0x42   :  { %741 = vmatprep.subr.mxu0 %v442_v31  ;;  %769 = vmatpush3.msra.mxu1 %v585_v45 }
  0x43   :  { %742 = vmatpush3.msra.mxu0 %v442_v31  ;;  %770 = vmatprep.subr.mxu1 %v584_v47 }
  0x44   :  { %743 = vmatprep.subr.mxu0 %v441_v33  ;;  %771 = vmatpush3.msra.mxu1 %v584_v47  ;;  %v100_v47 = vld [vmem:[#allocation2 + $0xa8] sm:$0xff] }
  0x45   :  { %210 = vbcast.lane.b32.xlu1 %v204_v10, 264  ;;  %206 = vbcast.lane.b32.xlu0 %v204_v10, 256  ;;  %v84_v10 = vld [vmem:[#allocation2 + $0x28] sm:$0xff] }
  0x46   :  { %744 = vmatpush3.msra.mxu0 %v441_v33  ;;  %772 = vmatprep.subr.mxu1 %v583_v48 }
  0x47   :  { %745 = vmatprep.subr.mxu0 %v440_v34  ;;  %773 = vmatpush3.msra.mxu1 %v583_v48  ;;  %v99_v48 = vld [vmem:[#allocation2 + $0xa0] sm:$0xff] }
  0x48   :  { %746 = vmatpush3.msra.mxu0 %v440_v34  ;;  %774 = vmatprep.subr.mxu1 %v582_v49 }
  0x49   :  { %221 = vbcast.lane.b32.xlu1 %v215_v11, 264  ;;  %217 = vbcast.lane.b32.xlu0 %v215_v11, 256  ;;  %v83_v11 = vld [vmem:[#allocation2 + $0x20] sm:$0xff] }
  0x4a   :  { %747 = vmatprep.subr.mxu0 %v439_v36  ;;  %775 = vmatpush3.msra.mxu1 %v582_v49 }
  0x4b   :  { %748 = vmatpush3.msra.mxu0 %v439_v36  ;;  %776 = vmatprep.subr.mxu1 %v581_v50 }
  0x4c   :  { %749 = vmatprep.subr.mxu0 %v438_v38  ;;  %777 = vmatpush3.msra.mxu1 %v581_v50 }
  0x4d   :  { %155 = vbcast.lane.b32.xlu1 %v149_v13, 264  ;;  %151 = vbcast.lane.b32.xlu0 %v149_v13, 256 }
  0x4e   :  { %750 = vmatpush3.msra.mxu0 %v438_v38  ;;  %778 = vmatprep.subr.mxu1 %v580_v51  ;;  %v95_v38 = vld [vmem:[#allocation2 + $0x80] sm:$0xff] }
  0x4f   :  { %751 = vmatprep.subr.mxu0 %v437_v39  ;;  %779 = vmatpush3.msra.mxu1 %v580_v51 }
  0x50   :  { %752 = vmatpush3.msra.mxu0 %v437_v39  ;;  %780 = vmatprep.subr.mxu1 %v579_v52 }
  0x51   :  { %232 = vbcast.lane.b32.xlu1 %v226_v14, 264  ;;  %228 = vbcast.lane.b32.xlu0 %v226_v14, 256 }
  0x52   :  { %753 = vmatprep.subr.mxu0 %v436_v40  ;;  %781 = vmatpush3.msra.mxu1 %v579_v52 }
  0x53   :  { %754 = vmatpush3.msra.mxu0 %v436_v40  ;;  %782 = vmatprep.subr.mxu1 %v578_v53  ;;  %v90_v40 = vld [vmem:[#allocation2 + $0x58] sm:$0xff] }
  0x54   :  { %755 = vmatprep.subr.mxu0 %v435_v41  ;;  %783 = vmatpush3.msra.mxu1 %v578_v53 }
  0x55   :  { %166 = vbcast.lane.b32.xlu1 %v160_v16, 264  ;;  %162 = vbcast.lane.b32.xlu0 %v160_v16, 256 }
  0x56   :  { %756 = vmatpush3.msra.mxu0 %v435_v41  ;;  %784 = vmatprep.subr.mxu1 %v577_v54  ;;  %v89_v41 = vld [vmem:[#allocation2 + $0x50] sm:$0xff] }
  0x57   :  { %757 = vmatprep.subr.mxu0 %v434_v44  ;;  %785 = vmatpush3.msra.mxu1 %v577_v54  ;;  %v102_v54 = vld [vmem:[#allocation2 + $0xb8] sm:$0xff] }
  0x58   :  { %758 = vmatpush3.msra.mxu0 %v434_v44  ;;  %786 = vmatprep.subr.mxu1 %v576_v55 }
  0x59   :  { %243 = vbcast.lane.b32.xlu1 %v237_v17, 264  ;;  %239 = vbcast.lane.b32.xlu0 %v237_v17, 256 }
  0x5a   :  { %759 = vmatprep.subr.mxu0 %v433_v46  ;;  %787 = vmatpush3.msra.mxu1 %v576_v55  ;;  %v101_v55 = vld [vmem:[#allocation2 + $0xb0] sm:$0xff] }
  0x5b   :  { %760 = vmatpush3.msra.mxu0 %v433_v46 }
  0x5d   :  { %177 = vbcast.lane.b32.xlu1 %v171_v19, 264  ;;  %173 = vbcast.lane.b32.xlu0 %v171_v19, 256 }
  0x61   :  { %254 = vbcast.lane.b32.xlu1 %v248_v22, 264  ;;  %250 = vbcast.lane.b32.xlu0 %v248_v22, 256 }
  0x65   :  { %188 = vbcast.lane.b32.xlu1 %v182_v26, 264  ;;  %184 = vbcast.lane.b32.xlu0 %v182_v26, 256  ;;  %v88_v26 = vld [vmem:[#allocation2 + $0x48] sm:$0xff] }
  0x69   :  { %265 = vbcast.lane.b32.xlu1 %v259_v29, 264  ;;  %261 = vbcast.lane.b32.xlu0 %v259_v29, 256 }
  0x6d   :  { %199 = vbcast.lane.b32.xlu1 %v193_v32, 264  ;;  %195 = vbcast.lane.b32.xlu0 %v193_v32, 256 }
  0x71   :  { %276 = vbcast.lane.b32.xlu1 %v270_v35, 264  ;;  %272 = vbcast.lane.b32.xlu0 %v270_v35, 256 }
  0x75   :  { %287 = vbcast.lane.b32.xlu1 %v281_v37, 264  ;;  %283 = vbcast.lane.b32.xlu0 %v281_v37, 256  ;;  %v96_v37 = vld [vmem:[#allocation2 + $0x88] sm:$0xff] }
  0xab   :  { %v130_v56 = vpop.permute.xlu1 %129  ;;  %v119_v57 = vpop.permute.xlu0 %118 }
  0xac   :  { %v291_v12 = vmul.f32 %v130_v56, %v81_v4  ;;  %v289_v13 = vmul.f32 %v119_v57, %v79_v7 }
  0xaf   :  { %v134_v58 = vpop.permute.xlu1 %133  ;;  %v123_v59 = vpop.permute.xlu0 %122 }
  0xb0   :  { %v292_v8 = vmul.f32 %v134_v58, %v82_v2  ;;  %v290_v9 = vmul.f32 %v123_v59, %v80_v3 }
  0xb2   :  { %v328_v16 = vadd.f32 %v292_v8, %v291_v12  ;;  %v321_v19 = vadd.f32 %v290_v9, %v289_v13 }
  0xb3   :  { %v145_v60 = vpop.permute.xlu1 %144  ;;  %v141_v61 = vpop.permute.xlu0 %140 }
  0xb4   :  { %v294_v17 = vmul.f32 %v145_v60, %v84_v10  ;;  %v293_v18 = vmul.f32 %v141_v61, %v83_v11  ;;  %v329_v24 = vrot.slane %v328_v16, 4  ;;  %v322_v28 = vrot.slane %v321_v19, 4 }
  0xb6   :  { %v335_v25 = vadd.f32 %v294_v17, %v293_v18  ;;  %v330_v35 = vadd.f32 %v329_v24, %v328_v16  ;;  %v323_v39 = vadd.f32 %v322_v28, %v321_v19 }
  0xb7   :  { %v211_v62 = vpop.permute.xlu1 %210  ;;  %v207_v63 = vpop.permute.xlu0 %206 }
  0xb8   :  { %v336_v36 = vrot.slane %v335_v25, 4  ;;  %v306_v45 = vmul.f32 %v211_v62, %v96_v37  ;;  %v305_v46 = vmul.f32 %v207_v63, %v95_v38  ;;  %v331_v52 = vrot.slane %v330_v35, 2  ;;  %v104_v62 = vld [vmem:[#allocation2 + $0xc8] sm:$0xff]  ;;  %v103_v63 = vld [vmem:[#allocation2 + $0xc0] sm:$0xff]  ;;  %v105_v37 = vld [vmem:[#allocation2 + $0xd0] sm:$0xff] }
  0xb9   :  { %v324_v58 = vrot.slane %v323_v39, 2 }
  0xba   :  { %v337_v53 = vadd.f32 %v336_v36, %v335_v25  ;;  %v332_v11 = vadd.f32 %v331_v52, %v330_v35  ;;  %v93_v52 = vld [vmem:[#allocation2 + $0x70] sm:$0xff] }
  0xbb   :  { %v222_v0 = vpop.permute.xlu1 %221  ;;  %v218_v1 = vpop.permute.xlu0 %217  ;;  %v325_v19 = vadd.f32 %v324_v58, %v323_v39 }
  0xbc   :  { %v308_v59 = vmul.f32 %v222_v0, %v98_v42  ;;  %v307_v60 = vmul.f32 %v218_v1, %v97_v43  ;;  %v338_v12 = vrot.slane %v337_v53, 2  ;;  %v92_v0 = vld [vmem:[#allocation2 + $0x68] sm:$0xff]  ;;  %v91_v1 = vld [vmem:[#allocation2 + $0x60] sm:$0xff]  ;;  %v333_v25 = vrot.slane %v332_v11, 1 }
  0xbe   :  { %v384_v13 = vadd.f32 %v308_v59, %v307_v60  ;;  %v334_v43 = vadd.f32 %v333_v25, %v332_v11 }
  0xbf   :  { %v156_v5 = vpop.permute.xlu1 %155  ;;  %v152_v6 = vpop.permute.xlu0 %151 }
  0xc0   :  { %v296_v29 = vmul.f32 %v156_v5, %v86_v20  ;;  %v295_v30 = vmul.f32 %v152_v6, %v85_v21  ;;  %v377_v5 = vadd.f32 %v306_v45, %v305_v46 }
  0xc2   :  { %v342_v44 = vadd.f32 %v296_v29, %v295_v30  ;;  %v378_v20 = vrot.slane %v377_v5, 4  ;;  %v385_v29 = vrot.slane %v384_v13, 4 }
  0xc3   :  { %v233_v14 = vpop.permute.xlu1 %232  ;;  %v229_v15 = vpop.permute.xlu0 %228 }
  0xc4   :  { %v343_v61 = vrot.slane %v342_v44, 4  ;;  %v310_v2 = vmul.f32 %v233_v14, %v100_v47  ;;  %v309_v3 = vmul.f32 %v229_v15, %v99_v48  ;;  %v379_v38 = vadd.f32 %v378_v20, %v377_v5 }
  0xc5   :  { %v386_v47 = vadd.f32 %v385_v29, %v384_v13 }
  0xc6   :  { %v344_v14 = vadd.f32 %v343_v61, %v342_v44  ;;  %v391_v15 = vadd.f32 %v310_v2, %v309_v3 }
  0xc7   :  { %v167_v22 = vpop.permute.xlu1 %166  ;;  %v163_v23 = vpop.permute.xlu0 %162  ;;  %v387_v5 = vrot.slane %v386_v47, 2 }
  0xc8   :  { %v298_v31 = vmul.f32 %v167_v22, %v88_v26  ;;  %v297_v32 = vmul.f32 %v163_v23, %v87_v27  ;;  %v339_v26 = vadd.f32 %v338_v12, %v337_v53  ;;  %v392_v35 = vrot.slane %v391_v15, 4 }
  0xca   :  { %v349_v49 = vadd.f32 %v298_v31, %v297_v32  ;;  %v106_v32 = vld [vmem:[#allocation2 + $0xd8] sm:$0xff]  ;;  %v340_v44 = vrot.slane %v339_v26, 1 }
  0xcb   :  { %v244_v33 = vpop.permute.xlu1 %243  ;;  %v240_v34 = vpop.permute.xlu0 %239 }
  0xcc   :  { %v350_v6 = vrot.slane %v349_v49, 4  ;;  %v312_v7 = vmul.f32 %v244_v33, %v102_v54  ;;  %v311_v8 = vmul.f32 %v240_v34, %v101_v55  ;;  %v326_v33 = vrot.slane %v325_v19, 1 }
  0xcd   :  { %v345_v34 = vrot.slane %v344_v14, 2  ;;  %v393_v55 = vadd.f32 %v392_v35, %v391_v15  ;;  %v341_v3 = vadd.f32 %v340_v44, %v339_v26  ;;  %v110_v26 = vld [vmem:[#allocation2 + $0xf8] sm:$0xff] }
  0xce   :  { %v351_v21 = vadd.f32 %v350_v6, %v349_v49  ;;  %v398_v22 = vadd.f32 %v312_v7, %v311_v8  ;;  %v327_v53 = vadd.f32 %v326_v33, %v325_v19 }
  0xcf   :  { %v178_v50 = vpop.permute.xlu1 %177  ;;  %v174_v51 = vpop.permute.xlu0 %173  ;;  %v346_v54 = vadd.f32 %v345_v34, %v344_v14  ;;  %v394_v13 = vrot.slane %v393_v55, 2 }
  0xd0   :  { %v300_v56 = vmul.f32 %v178_v50, %v90_v40  ;;  %v299_v57 = vmul.f32 %v174_v51, %v89_v41  ;;  %v352_v39 = vrot.slane %v351_v21, 2  ;;  %v399_v40 = vrot.slane %v398_v22, 4  ;;  %v94_v51 = vld [vmem:[#allocation2 + $0x78] sm:$0xff] }
  0xd1   :  { %v473_v11 = vsel %vm472_vm0, %v334_v43, %v327_v53  ;;  %v347_v12 = vrot.slane %v346_v54, 1  ;;  %v395_v33 = vadd.f32 %v394_v13, %v393_v55 }
  0xd2   :  { %v356_v4 = vadd.f32 %v300_v56, %v299_v57  ;;  %v380_v57 = vrot.slane %v379_v38, 2  ;;  %v353_v58 = vadd.f32 %v352_v39, %v351_v21  ;;  %v400_v59 = vadd.f32 %v399_v40, %v398_v22 }
  0xd3   :  { %v255_v9 = vpop.permute.xlu1 %254  ;;  %v251_v10 = vpop.permute.xlu0 %250  ;;  %v348_v29 = vadd.f32 %v347_v12, %v346_v54 }
  0xd4   :  { %v357_v16 = vrot.slane %v356_v4, 4  ;;  %v314_v17 = vmul.f32 %v255_v9, %v104_v62  ;;  %v313_v18 = vmul.f32 %v251_v10, %v103_v63  ;;  %v108_v9 = vld [vmem:[#allocation2 + $0xe8] sm:$0xff]  ;;  %v107_v10 = vld [vmem:[#allocation2 + $0xe0] sm:$0xff]  ;;  %v381_v15 = vadd.f32 %v380_v57, %v379_v38 }
  0xd6   :  { %v358_v30 = vadd.f32 %v357_v16, %v356_v4  ;;  %v405_v31 = vadd.f32 %v314_v17, %v313_v18  ;;  %v354_v17 = vrot.slane %v353_v58, 1  ;;  %v401_v18 = vrot.slane %v400_v59, 2 }
  0xd7   :  { %v189_v23 = vpop.permute.xlu1 %188  ;;  %v185_v24 = vpop.permute.xlu0 %184  ;;  %v382_v43 = vrot.slane %v381_v15, 1 }
  0xd8   :  { %v302_v27 = vmul.f32 %v189_v23, %v92_v0  ;;  %v301_v28 = vmul.f32 %v185_v24, %v91_v1  ;;  %v359_v48 = vrot.slane %v358_v30, 2  ;;  %v406_v49 = vrot.slane %v405_v31, 4 }
  0xd9   :  { %v388_v23 = vadd.f32 %v387_v5, %v386_v47  ;;  %v355_v34 = vadd.f32 %v354_v17, %v353_v58  ;;  %v402_v35 = vadd.f32 %v401_v18, %v400_v59 }
  0xda   :  { %v363_v36 = vadd.f32 %v302_v27, %v301_v28  ;;  %v360_v6 = vadd.f32 %v359_v48, %v358_v30  ;;  %v407_v7 = vadd.f32 %v406_v49, %v405_v31  ;;  %v109_v27 = vld [vmem:[#allocation2 + $0xf0] sm:$0xff]  ;;  %v475_v28 = vsel %vm474_vm1, %v341_v3, %v473_v11 }
  0xdb   :  { %v266_v41 = vpop.permute.xlu1 %265  ;;  %v262_v42 = vpop.permute.xlu0 %261  ;;  %v389_v44 = vrot.slane %v388_v23, 1  ;;  %v477_v54 = vsel %vm476_vm2, %v348_v29, %v475_v28 }
  0xdc   :  { %v364_v45 = vrot.slane %v363_v36, 4  ;;  %v316_v46 = vmul.f32 %v266_v41, %v106_v32  ;;  %v315_v50 = vmul.f32 %v262_v42, %v105_v37  ;;  %v361_v24 = vrot.slane %v360_v6, 1 }
  0xdd   :  { %v408_v25 = vrot.slane %v407_v7, 2  ;;  %v479_v58 = vsel %vm478_vm3, %v355_v34, %v477_v54  ;;  %v390_v59 = vadd.f32 %v389_v44, %v388_v23  ;;  %v574_v23 = vld [vmem:[#allocation8 + $0x10] sm:$0xff] }
  0xde   :  { %v365_v56 = vadd.f32 %v364_v45, %v363_v36  ;;  %v412_v60 = vadd.f32 %v316_v46, %v315_v50  ;;  %v362_v45 = vadd.f32 %v361_v24, %v360_v6  ;;  %v573_v24 = vld [vmem:[#allocation8 + $0x8] sm:$0xff] }
  0xdf   :  { %v200_v61 = vpop.permute.xlu1 %199  ;;  %v196_v2 = vpop.permute.xlu0 %195  ;;  %v409_v46 = vadd.f32 %v408_v25, %v407_v7  ;;  %v572_v25 = vld [vmem:[#allocation8] sm:$0xff] }
  0xe0   :  { %v366_v4 = vrot.slane %v365_v56, 2  ;;  %v304_v62 = vmul.f32 %v200_v61, %v94_v51  ;;  %v303_v63 = vmul.f32 %v196_v2, %v93_v52  ;;  %v413_v8 = vrot.slane %v412_v60, 4 }
  0xe1   :  { %v396_v51 = vrot.slane %v395_v33, 1  ;;  %v403_v52 = vrot.slane %v402_v35, 1  ;;  %v481_v61 = vsel %vm480_vm4, %v362_v45, %v479_v58 }
  0xe2   :  { %v370_v16 = vadd.f32 %v304_v62, %v303_v63  ;;  %v367_v0 = vadd.f32 %v366_v4, %v365_v56  ;;  %v414_v1 = vadd.f32 %v413_v8, %v412_v60  ;;  %v410_v60 = vrot.slane %v409_v46, 1 }
  0xe3   :  { %v277_v19 = vpop.permute.xlu1 %276  ;;  %v273_v14 = vpop.permute.xlu0 %272  ;;  %v383_v63 = vadd.f32 %v382_v43, %v381_v15  ;;  %v397_v5 = vadd.f32 %v396_v51, %v395_v33  ;;  %v404_v7 = vadd.f32 %v403_v52, %v402_v35  ;;  %v692_v33 = vld [vmem:[%s1041_s5] ss:$0 sm:$0xff] }
  0xe4   :  { %v371_v20 = vrot.slane %v370_v16, 4  ;;  %v318_v21 = vmul.f32 %v277_v19, %v108_v9  ;;  %v317_v22 = vmul.f32 %v273_v14, %v107_v10  ;;  %v415_v30 = vrot.slane %v414_v1, 2 }
  0xe5   :  { %v368_v38 = vrot.slane %v367_v0, 1  ;;  %v411_v11 = vadd.f32 %v410_v60, %v409_v46  ;;  %v486_v12 = vsel %vm472_vm0, %v390_v59, %v383_v63 }
  0xe6   :  { %v372_v31 = vadd.f32 %v371_v20, %v370_v16  ;;  %v419_v32 = vadd.f32 %v318_v21, %v317_v22  ;;  %v416_v47 = vadd.f32 %v415_v30, %v414_v1  ;;  %v487_v18 = vsel %vm474_vm1, %v397_v5, %v486_v12  ;;  %v575_v22 = vld [vmem:[#allocation8 + $0x18] sm:$0xff] }
  0xe7   :  { %v288_v36 = vpop.permute.xlu1 %287  ;;  %v284_v37 = vpop.permute.xlu0 %283  ;;  %v369_v53 = vadd.f32 %v368_v38, %v367_v0  ;;  %v488_v1 = vsel %vm476_vm2, %v404_v7, %v487_v18  ;;  %788 = vmatprep.subr.mxu1 %v575_v22 }
  0xe8   :  { %v373_v39 = vrot.slane %v372_v31, 2  ;;  %v420_v40 = vrot.slane %v419_v32, 4  ;;  %v320_v41 = vmul.f32 %v288_v36, %v110_v26  ;;  %v319_v42 = vmul.f32 %v284_v37, %v109_v27  ;;  %789 = vmatpush3.msra.mxu1 %v575_v22  ;;  %v691_v26 = vld [vmem:[%s1039_s3] ss:$0 sm:$0xff]  ;;  %s886_s3 = scalar_lea.vmem %s678_s20, 256 }
  0xe9   :  { %v417_v2 = vrot.slane %v416_v47, 1  ;;  %v483_v6 = vsel %vm482_vm5, %v369_v53, %v481_v61  ;;  %v489_v19 = vsel %vm478_vm3, %v411_v11, %v488_v1  ;;  %790 = vmatprep.subr.mxu1 %v574_v23  ;;  %p887_p6 = scmp.ne.s32.totalorder %s678_s20, %s886_s3  ;;  %p892_p8 = scmp.lt.s32.totalorder %s886_s3, %s886_s3 }
  0xea   :  { %v421_v48 = vadd.f32 %v420_v40, %v419_v32  ;;  %v426_v49 = vadd.f32 %v320_v41, %v319_v42  ;;  %v374_v50 = vadd.f32 %v373_v39, %v372_v31  ;;  %791 = vmatpush3.msra.mxu1 %v574_v23 }
  0xeb   :  { %v418_v13 = vadd.f32 %v417_v2, %v416_v47  ;;  %792 = vmatprep.subr.mxu1 %v573_v24  ;;  %p893_p9 = por %p892_p8, %p891_p7 }
  0xec   :  { %v422_v55 = vrot.slane %v421_v48, 2  ;;  %v427_v56 = vrot.slane %v426_v49, 4  ;;  %v375_v57 = vrot.slane %v374_v50, 1  ;;  %793 = vmatpush3.msra.mxu1 %v573_v24 }
  0xed   :  { %v490_v15 = vsel %vm480_vm4, %v418_v13, %v489_v19  ;;  %794 = vmatprep.subr.mxu1 %v572_v25  ;;  %p894_p10 = pnand %p893_p9, %p887_p6 }
  0xee   :  { %v423_v3 = vadd.f32 %v422_v55, %v421_v48  ;;  %v428_v4 = vadd.f32 %v427_v56, %v426_v49  ;;  %v376_v62 = vadd.f32 %v375_v57, %v374_v50  ;;  %795 = vmatpush3.msra.mxu1 %v572_v25 }
  0xf0   :  { %v424_v8 = vrot.slane %v423_v3, 1  ;;  %v429_v9 = vrot.slane %v428_v4, 2  ;;  %v485_v10 = vsel %vm484_vm6, %v376_v62, %v483_v6 }
  0xf1   :  { %761 = vmatprep.mubr.f32.mxu0 %v485_v10 }
  0xf2   :  { %v430_v16 = vadd.f32 %v429_v9, %v428_v4  ;;  %v425_v17 = vadd.f32 %v424_v8, %v423_v3 }
  0xf4   :  { %v431_v0 = vrot.slane %v430_v16, 1  ;;  %v491_v20 = vsel %vm482_vm5, %v425_v17, %v490_v15 }
  0xf6   :  { %v432_v14 = vadd.f32 %v431_v0, %v430_v16 }
  0xf8   :  { %v492_v21 = vsel %vm484_vm6, %v432_v14, %v491_v20 }
  0xf9   :  { %762 = vmatmul.mubr.f32.vlgmr.msra.gmra.mxu0 %v492_v21 }
 0x1b9   :  { %v763_v27 = vpop.f32.mrf.mxu0 }
 0x1ba   :  { %v567_v28 = vadd.f32 %v763_v27, %v691_v26 }
 0x1bb   :  { %v561_v29 = vpop.f32.mrf.mxu0 }
 0x1bc   :  { %v562_v30 = vadd.f32 %v691_v26, %v561_v29  ;;  %v571_v32 = vmax.f32 %v567_v28, 0.0 }
 0x1be   :  { %v570_v31 = vmax.f32 %v562_v30, 0.0 }
 0x1c0   :  { %796 = vmatprep.mubr.f32.mxu1 %v570_v31 }
 0x1c1   :  { %797 = vmatmul.mubr.f32.vlgmr.msra.gmra.mxu1 %v571_v32 }
 0x281   :  { %v798_v34 = vpop.f32.mrf.mxu1 }
 0x282   :  { %v667_v35 = vadd.f32 %v798_v34, %v692_v33 }
 0x283   :  { %v661_v36 = vpop.f32.mrf.mxu1 }
 0x284   :  { %671 = vst [vmem:[#allocation10 + $0x8] sm:$0xff] %v667_v35  ;;  %v662_v37 = vadd.f32 %v692_v33, %v661_v36 }
 0x286   :  { %670 = vst [vmem:[#allocation10] sm:$0xff] %v662_v37 }
 0x287   :  { %897 = shalt.err (!%p894_p10)
}
 0x288   :  { %683 = dma.vmem_to_hbm [thread:$0]  %s678_s20, 256, %s1042_s6, [#allocation4], %s916_s26, %s916_s26, %s917_s27  }
 0x289   :  { %912 = dma.done.wait [#allocation4], 256  }
 0x28a   :  { %913 = vsyncadd [#allocation4], 4294967040 }
 0x28b   :  { %687 = vsyncpa [#allocation3], 1 }
 0x28c   :  { %688 = vsyncpa [#allocation6], 1 }
 0x28d   :  { %689 = vsyncpa [#allocation9], 1 }
 0x28e   :  { %690 = vsyncpa [#allocation4], 1 }

</bundles_post_ra>
